<compile_context>
chip_gen: v7x
topology: tpu7x:2x2x1
jax: 0.10.0
libtpu: 0.0.40
codegen_flags: <defaults>
</compile_context>

<pallas_src>
import functools

import jax
import jax.numpy as jnp
from jax.experimental import pallas as pl
from jax.experimental.pallas import tpu as pltpu

TOKEN_SELF_ATTN_VALUE = -5e4  # same constant as reformer_pytorch


# --------------------------------------------------------------------------
# Pallas kernels: linear projections (bf16 weights, f32 accumulation)
# --------------------------------------------------------------------------

def _matmul_kernel(x_ref, w_ref, o_ref):
    # x: (TM, K) f32 -> bf16; w: (K, TN) already bf16; f32 accumulation.
    o_ref[...] = jnp.dot(x_ref[...].astype(jnp.bfloat16), w_ref[...],
                         preferred_element_type=jnp.float32)


def _matmul_bias_kernel(x_ref, w_ref, b_ref, o_ref):
    o_ref[...] = (
        jnp.dot(x_ref[...].astype(jnp.bfloat16), w_ref[...],
                preferred_element_type=jnp.float32)
        + b_ref[...]
    )


def _pick_tile(n, target, align):
    """Largest tile <= target that either equals n or divides n and is a
    multiple of `align` (keeps the (8,128) block constraint satisfied)."""
    if n <= target:
        return n
    t = (target // align) * align
    while t >= align:
        if n % t == 0:
            return t
        t -= align
    return (target // align) * align   # ragged final block (stores masked)


def pallas_matmul(x, w, b=None, *, tm=512, tn=2048):
    """y = x @ w (+ b).  x: (M, K) f32, w: (K, N) bf16, b: (N,) f32 or None."""
    M, K = x.shape
    N = w.shape[1]
    tm = _pick_tile(M, tm, 8)
    tn = _pick_tile(N, tn, 128)
    gm = pl.cdiv(M, tm)
    gn = pl.cdiv(N, tn)
    single_n = gn == 1

    def w_spec(shape):
        # Weights/bias never change across the row-tile axis; when they fit in
        # one N tile their index_map is constant -> single-buffer them.
        if single_n:
            return pl.BlockSpec(shape, lambda i, j: (0, j),
                                pipeline_mode=pl.Buffered(1))
        return pl.BlockSpec(shape, lambda i, j: (0, j))

    in_specs = [pl.BlockSpec((tm, K), lambda i, j: (i, 0)), w_spec((K, tn))]
    args = [x, w]
    if b is not None:
        in_specs.append(w_spec((1, tn)))
        args.append(b.reshape(1, N))
        kernel = _matmul_bias_kernel
    else:
        kernel = _matmul_kernel

    grid_spec = pltpu.PrefetchScalarGridSpec(
        num_scalar_prefetch=0,
        grid=(gm, gn),
        in_specs=in_specs,
        out_specs=pl.BlockSpec((tm, tn), lambda i, j: (i, j)),
    )
    return pl.pallas_call(
        kernel,
        out_shape=jax.ShapeDtypeStruct((M, N), jnp.float32),
        grid_spec=grid_spec,
        compiler_params=pltpu.CompilerParams(
            dimension_semantics=("parallel", "parallel"),
            vmem_limit_bytes=48 << 20),
    )(*args)


# --------------------------------------------------------------------------
# Pallas kernel: batched LSH bucket attention
# --------------------------------------------------------------------------

def _lsh_attn_kernel(scale, cb, qk_ref, qkp_ref, v_ref, vp_ref, t_ref, tp_ref,
                     o_ref, lse_ref):
    # qk_ref : (CB, Wq, D)  bf16  current chunks (queries AND un-normalized keys)
    # qkp_ref: (1, Wq, D)   bf16  last chunk of previous chunk-block (look-back wrap)
    # v_ref  : (CB, Wq, Dv) bf16, vp_ref: (1, Wq, Dv) bf16
    # t_ref  : (CB, 1, Wq)  int32 sorted sequence positions, tp_ref: (1, 1, Wq)
    # o_ref  : (CB, Wq, Dv) f32,  lse_ref: (CB, Wq) f32
    qk_cur = qk_ref[...]
    v_cur = v_ref[...]
    t_cur = t_ref[...][:, 0, :]                                 # (CB, Wq)
    t_prev = tp_ref[...][:, 0, :]                               # (1,  Wq)

    # key normalization (reformer: k = qk/||qk||) once on the current chunks
    # and once on the single look-back chunk; rsqrt goes to the EUP slot.
    qk_f = qk_cur.astype(jnp.float32)
    inv = jax.lax.rsqrt(jnp.maximum(
        jnp.sum(qk_f * qk_f, axis=-1, keepdims=True), 1e-24))
    k_cur = (qk_f * inv).astype(jnp.bfloat16)

    qkp_f = qkp_ref[...].astype(jnp.float32)
    invp = jax.lax.rsqrt(jnp.maximum(
        jnp.sum(qkp_f * qkp_f, axis=-1, keepdims=True), 1e-24))
    k_prev = (qkp_f * invp).astype(jnp.bfloat16)

    # scale folded into the query before the bf16 cast (D-wide, not 2Wq-wide)
    q_b = (qk_f * scale).astype(jnp.bfloat16)

    # look-one-back: chunk i attends to keys of chunk i and chunk i-1
    if cb > 1:
        k_look = jnp.concatenate([k_prev, k_cur[: cb - 1]], axis=0)
        v_look = jnp.concatenate([vp_ref[...], v_cur[: cb - 1]], axis=0)
        t_look = jnp.concatenate([t_prev, t_cur[: cb - 1]], axis=0)
    else:
        k_look, v_look, t_look = k_prev, vp_ref[...], t_prev

    # two logit blocks; no (CB, 2Wq, D/Dv) key/value concatenation in VMEM
    d_cur = jnp.einsum("cqd,ckd->cqk", q_b, k_cur,
                       preferred_element_type=jnp.float32)
    d_look = jnp.einsum("cqd,ckd->cqk", q_b, k_look,
                        preferred_element_type=jnp.float32)

    # mask attention-to-self (computed in-kernel from int32 positions)
    d_cur = jnp.where(t_cur[:, :, None] == t_cur[:, None, :],
                      TOKEN_SELF_ATTN_VALUE, d_cur)
    d_look = jnp.where(t_cur[:, :, None] == t_look[:, None, :],
                       TOKEN_SELF_ATTN_VALUE, d_look)

    # two-block stable softmax; normalization applied AFTER the PV matmul
    mx = jnp.maximum(jnp.max(d_cur, axis=-1, keepdims=True),
                     jnp.max(d_look, axis=-1, keepdims=True))
    e_cur = jnp.exp(d_cur - mx)
    e_look = jnp.exp(d_look - mx)
    s = (jnp.sum(e_cur, axis=-1, keepdims=True)
         + jnp.sum(e_look, axis=-1, keepdims=True))

    acc = (jnp.einsum("cqk,ckd->cqd", e_cur.astype(jnp.bfloat16), v_cur,
                      preferred_element_type=jnp.float32)
           + jnp.einsum("cqk,ckd->cqd", e_look.astype(jnp.bfloat16), v_look,
                        preferred_element_type=jnp.float32))

    o_ref[...] = acc * pl.reciprocal(s, approx=True)
    lse_ref[...] = (mx + jnp.log(s))[..., 0]


def _pick_chunk_batch(n_chunks, wq, d, dv, cap=32, vmem_budget=12 << 20):
    """Chunks processed per grid step, sized against a VMEM working-set budget
    (generation-aware: budget fits v7x's 64 MiB as well as v5e/v6e)."""
    per_chunk = (
        2 * wq * d * 2          # q_b + k_cur (bf16)
        + wq * d * 2            # k_look (bf16)
        + 2 * wq * dv * 2       # v_cur + v_look (bf16)
        + 2 * wq * wq * 4 * 2   # d_cur/d_look + e_cur/e_look (f32)
        + 2 * wq * dv * 4       # acc + output (f32)
    )
    return int(max(1, min(cap, n_chunks, vmem_budget // max(per_chunk, 1))))


def pallas_lsh_bucket_attention(sqk, sv, st, scale):
    """sqk: (bh, C, Wq, D) bf16 sorted qk; sv: (bh, C, Wq, Dv) bf16;
    st: (bh, C, 1, Wq) int32.  Returns o: (bh, C, Wq, Dv) f32,
    lse: (bh, C*Wq) f32 (chunk-major, matching sorted order)."""
    bh, n_chunks, wq, d = sqk.shape
    dv = sv.shape[-1]
    cb = _pick_chunk_batch(n_chunks, wq, d, dv)

    # pad chunk count to a multiple of cb; padded chunks never feed real
    # chunks (look-back of chunk 0 wraps to the last REAL chunk) and their
    # outputs are sliced off below.
    n_pad = -(-n_chunks // cb) * cb
    if n_pad != n_chunks:
        pad = n_pad - n_chunks
        sqk = jnp.concatenate(
            [sqk, jnp.zeros((bh, pad, wq, d), sqk.dtype)], axis=1)
        sv = jnp.concatenate(
            [sv, jnp.zeros((bh, pad, wq, dv), sv.dtype)], axis=1)
        st = jnp.concatenate(
            [st, jnp.full((bh, pad, 1, wq), -1, st.dtype)], axis=1)
    n_cblk = n_pad // cb

    def cur4(b, c):
        return (b, c, 0, 0)

    def prev4(b, c):
        # last chunk of the previous chunk-block, wrapping over REAL chunks
        return (b, (c * cb + n_chunks - 1) % n_chunks, 0, 0)

    kernel = functools.partial(_lsh_attn_kernel, scale, cb)
    grid_spec = pltpu.PrefetchScalarGridSpec(
        num_scalar_prefetch=0,
        grid=(bh, n_cblk),
        in_specs=[
            pl.BlockSpec((None, cb, wq, d), cur4),
            pl.BlockSpec((None, 1, wq, d), prev4),
            pl.BlockSpec((None, cb, wq, dv), cur4),
            pl.BlockSpec((None, 1, wq, dv), prev4),
            pl.BlockSpec((None, cb, 1, wq), cur4),
            pl.BlockSpec((None, 1, 1, wq), prev4),
        ],
        out_specs=[
            pl.BlockSpec((None, cb, wq, dv), cur4),
            pl.BlockSpec((None, None, cb, wq), cur4),   # dense (cb, Wq) lse slab
        ],
    )
    o, lse = pl.pallas_call(
        kernel,
        out_shape=(
            jax.ShapeDtypeStruct((bh, n_pad, wq, dv), jnp.float32),
            jax.ShapeDtypeStruct((bh, n_cblk, cb, wq), jnp.float32),
        ),
        grid_spec=grid_spec,
        compiler_params=pltpu.CompilerParams(
            dimension_semantics=("parallel", "parallel"),
            vmem_limit_bytes=48 << 20),
    )(sqk, sqk, sv, sv, st, st)

    o = o[:, :n_chunks]
    lse = lse.reshape(bh, n_pad * wq)[:, : n_chunks * wq]
    return o, lse


# --------------------------------------------------------------------------
# LSH attention (glue in plain JAX, hot path in Pallas)
# --------------------------------------------------------------------------

def lsh_attention(qk, v, *, bucket_size, n_hashes, rotation_key):
    """qk, v: (B*H, N, dh) f32. Returns (B*H, N, dh) f32."""
    bh, seqlen, dim = qk.shape
    assert seqlen % (bucket_size * 2) == 0
    n_buckets = seqlen // bucket_size

    # -- hash_vectors (random rotations + argmax), f32 --
    rot = jax.random.normal(
        rotation_key, (1, dim, n_hashes, n_buckets // 2), dtype=qk.dtype)
    rot = jnp.broadcast_to(rot, (bh, dim, n_hashes, n_buckets // 2))
    rotated = jnp.einsum("btf,bfhi->bhti", qk, rot)
    rotated = jnp.concatenate([rotated, -rotated], axis=-1)
    buckets = jnp.argmax(rotated, axis=-1)                       # (bh, H, N)
    offsets = (jnp.arange(n_hashes) * n_buckets).reshape(1, n_hashes, 1)
    buckets = (buckets + offsets).reshape(bh, n_hashes * seqlen)

    # -- sort by (bucket, position) --
    total = n_hashes * seqlen
    ticker = jnp.broadcast_to(jnp.arange(total, dtype=jnp.int32), (bh, total))
    buckets_and_t = seqlen * buckets + (ticker % seqlen)
    sticker = jnp.argsort(buckets_and_t, axis=-1).astype(jnp.int32)
    undo_sort = jnp.argsort(sticker, axis=-1).astype(jnp.int32)

    st = (sticker % seqlen).astype(jnp.int32)
    # gather in bf16: halves gather + HBM->VMEM traffic of the dominant inputs
    sqk = jnp.take_along_axis(qk.astype(jnp.bfloat16), st[..., None], axis=1)
    sv = jnp.take_along_axis(v.astype(jnp.bfloat16), st[..., None], axis=1)

    n_chunks = n_hashes * n_buckets
    wq = bucket_size
    dv = v.shape[-1]
    sqk_c = sqk.reshape(bh, n_chunks, wq, dim)
    sv_c = sv.reshape(bh, n_chunks, wq, dv)
    st_c = st.reshape(bh, n_chunks, 1, wq)

    # TODO(synk): reformer_pytorch additionally subtracts log duplicate-key counts
    # across hash rounds (allow_duplicate_attention=False path); default config
    # (allow_duplicate_attention=True) needs no correction, so it is omitted here.
    bo, slogits = pallas_lsh_bucket_attention(sqk_c, sv_c, st_c, dim ** -0.5)

    so = bo.reshape(bh, total, dv)

    # -- unsort and merge across hash rounds --
    o = jnp.take_along_axis(so, undo_sort[..., None], axis=1)
    logits = jnp.take_along_axis(slogits, undo_sort, axis=1)

    o = o.reshape(bh, n_hashes, seqlen, dv)
    logits = logits.reshape(bh, n_hashes, seqlen, 1)

    probs = jnp.exp(
        logits - jax.scipy.special.logsumexp(logits, axis=1, keepdims=True))
    return jnp.sum(o * probs, axis=1)


def lsh_self_attention(x, params, *, heads, bucket_size, n_hashes, hash_key):
    """x: (B, N, dim) -> (B, N, dim)."""
    B, N, dim = x.shape
    dh = dim // heads
    xf = x.reshape(B * N, dim)

    # fused to_qk / to_v: one bf16 matmul against the packed (K, 2*dim) weight
    qkv = pallas_matmul(xf, params["w_qkv"])
    qk = qkv[:, :dim].reshape(B, N, dim)
    v = qkv[:, dim:].reshape(B, N, dim)

    def split_heads(t):
        return (t.reshape(B, N, heads, dh)
                .transpose(0, 2, 1, 3).reshape(B * heads, N, dh))

    out_h = lsh_attention(
        split_heads(qk), split_heads(v),
        bucket_size=bucket_size, n_hashes=n_hashes, rotation_key=hash_key)

    out = (out_h.reshape(B, heads, N, dh)
           .transpose(0, 2, 1, 3).reshape(B * N, heads * dh))
    out = pallas_matmul(out, params["w_out"], params["b_out"])
    # TODO(synk): post_attn_dropout / dropout are p=0 in the reference config -> identity.
    return out.reshape(B, N, dim)


# --------------------------------------------------------------------------
# ReformerLayer forward
# --------------------------------------------------------------------------

def init_params(key, d_model):
    k1, k2, k3, k4 = jax.random.split(key, 4)
    scale = 1.0 / jnp.sqrt(d_model)
    # weights stored as (in, out) = transposed torch nn.Linear.weight.
    # to_qk / to_v are packed into one (d_model, 2*d_model) matrix and all
    # matmul weights are cast to bf16 ONCE here (kernels never re-cast them).
    w_qk = jax.random.normal(k1, (d_model, d_model), jnp.float32) * scale
    w_v = jax.random.normal(k2, (d_model, d_model), jnp.float32) * scale
    w_out = jax.random.normal(k3, (d_model, d_model), jnp.float32) * scale
    b_out = jax.random.normal(k4, (d_model,), jnp.float32) * scale
    return {
        "w_qkv": jnp.concatenate([w_qk, w_v], axis=1).astype(jnp.bfloat16),
        "w_out": w_out.astype(jnp.bfloat16),
        "b_out": b_out,
    }


def reformer_layer_forward(params, queries, keys, values, attn_mask, tau, delta,
                           *, n_heads, bucket_size, n_hashes, hash_key):
    """Matches ReformerLayer.forward: returns (out, None).
    keys / values / attn_mask / tau / delta are ignored (as in the reference)."""
    B, N, C = queries.shape
    # fit_length pads the tail and the forward immediately slices [:, :N, :],
    # so it is an identity on the data; replicated here for fidelity.
    req = bucket_size * 2
    if N % req != 0:
        fill = req - N % req
        q_pad = jnp.concatenate(
            [queries, jnp.zeros((B, fill, C), queries.dtype)], axis=1)
    else:
        q_pad = queries
    x = q_pad[:, :N, :]
    out = lsh_self_attention(
        x, params, heads=n_heads, bucket_size=bucket_size,
        n_hashes=n_hashes, hash_key=hash_key)
    return out, None


if __name__ == "__main__":
    B, N, d_model, n_heads = 2, 8, 32, 4
    bucket_size, n_hashes = 4, 4

    key = jax.random.PRNGKey(0)
    k_q, k_k, k_v, k_p, k_hash = jax.random.split(key, 5)

    queries = jax.random.normal(k_q, (B, N, d_model), jnp.float32)
    keys_in = jax.random.normal(k_k, (B, N, d_model), jnp.float32)
    values = jax.random.normal(k_v, (B, N, d_model), jnp.float32)
    params = init_params(k_p, d_model)

    out, attn = reformer_layer_forward(
        params, queries, keys_in, values, None, None, None,
        n_heads=n_heads, bucket_size=bucket_size, n_hashes=n_hashes,
        hash_key=k_hash)
    out = jax.block_until_ready(out)

    assert out.shape == (B, N, d_model), out.shape
    assert attn is None
    assert bool(jnp.all(jnp.isfinite(out)))
    print("KERNEL_OK")
</pallas_src>

<mosaic_0001>
module attributes {stable_mosaic.version = 11 : i64} {
  func.func @_matmul_kernel(%arg0: i32, %arg1: i32, %arg2: memref<16x32xf32, #tpu.memory_space<vmem>>, %arg3: memref<32x64xbf16, #tpu.memory_space<vmem>>, %arg4: memref<16x64xf32, #tpu.memory_space<vmem>>) attributes {dimension_semantics = [#tpu.dimension_semantics<parallel>, #tpu.dimension_semantics<parallel>], iteration_bounds = array<i64: 1, 1>, scalar_prefetch = 0 : i64, scratch_operands = 0 : i64, tpu.core_type = #tpu.core_type<tc>, window_params = [{transform_indices = @transform_0, window_bounds = array<i64: 16, 32>}, {pipeline_mode = #tpu.pipeline_mode<synchronous>, transform_indices = @transform_1, window_bounds = array<i64: 32, 64>}, {transform_indices = @transform_2, window_bounds = array<i64: 16, 64>}]} {
    %c0 = arith.constant 0 : index
    %c0_0 = arith.constant 0 : index
    %0 = vector.load %arg2[%c0, %c0_0] : memref<16x32xf32, #tpu.memory_space<vmem>>, vector<16x32xf32>
    %1 = arith.truncf %0 : vector<16x32xf32> to vector<16x32xbf16>
    %c0_1 = arith.constant 0 : index
    %c0_2 = arith.constant 0 : index
    %2 = vector.load %arg3[%c0_1, %c0_2] : memref<32x64xbf16, #tpu.memory_space<vmem>>, vector<32x64xbf16>
    %cst = arith.constant dense<0.000000e+00> : vector<16x64xf32>
    %3 = tpu.matmul %1, %2, %cst {dimension_numbers = #tpu.dot_dimension_numbers<[1], [0], [0], [1], [0, 0, 1, 1], [], []>} : vector<16x32xbf16>, vector<32x64xbf16>, vector<16x64xf32> -> vector<16x64xf32>
    %c0_3 = arith.constant 0 : index
    %c0_4 = arith.constant 0 : index
    %4 = vector.load %arg4[%c0_3, %c0_4] : memref<16x64xf32, #tpu.memory_space<vmem>>, vector<16x64xf32>
    tpu.vector_store %arg4[%c0_3, %c0_4], %3 {strides = array<i32>} : memref<16x64xf32, #tpu.memory_space<vmem>>, vector<16x64xf32>,
    return
  }
  func.func @transform_0(%arg0: i32, %arg1: i32) -> (i32, i32) {
    %c0_i32 = arith.constant 0 : i32
    %c0_i32_0 = arith.constant 0 : i32
    return %arg0, %c0_i32 : i32, i32
  }
  func.func @transform_1(%arg0: i32, %arg1: i32) -> (i32, i32) {
    %c0_i32 = arith.constant 0 : i32
    %c0_i32_0 = arith.constant 0 : i32
    return %c0_i32, %arg1 : i32, i32
  }
  func.func @transform_2(%arg0: i32, %arg1: i32) -> (i32, i32) {
    %c0_i32 = arith.constant 0 : i32
    return %arg0, %arg1 : i32, i32
  }
}

</mosaic_0001>

<bundles_post_ra>
// kernel: tpu_custom_call.1
= control target key start
LH: loop header
LB: loop body
LE: loop exit
PB: predicated region body
PF: predicated region fallthrough
CT: control target
= control target key end

     0   :  { %7 = vsyncpa [#allocation3], 0  ;;  %s289_s0 = inlined_call_operand.hbm [shape: f32[16,32], index: 0, kind: input, shape index: {}]   ;;  %s290_s1 = inlined_call_operand.hbm [shape: bf16[32,64], index: 1, kind: input, shape index: {}]   ;;  %s291_s2 = inlined_call_operand.hbm [shape: f32[16,64], index: 2, kind: output, shape index: {}]  }
   0x1   :  { %8 = vsyncpa [#allocation6], 0 }
   0x2   :  { %9 = vsyncpa [#allocation4], 0  ;;  %s223_s9 = smov [#allocation2]   ;;  %s151_s13 = scalar_lea.hbm %s289_s0, 256 }
   0x3   :  { %s15_s10 = sshll.u32 %s223_s9, 4  ;;  %p152_p0 = scmp.ne.s32.totalorder %s289_s0, %s151_s13  ;;  %s16_s10 = int_to_ptr.vmem [resolvable:$true] %s15_s10 }
   0x4   :  { %p155_p1 = scmp.lt.u32.totalorder %s151_s13, %s289_s0 }
   0x6   :  { %p157_p2 = pnand %p155_p1, %p152_p0 }
   0x8   :  { %160 = shalt.err (!%p157_p2)
}
   0x9   :  { %s161_s18 = scalar_lea.vmem %s16_s10, 256  ;;  %p166_p4 = scmp.lt.s32.totalorder %s16_s10, %s16_s10 }
   0xa   :  { %p162_p3 = scmp.ne.s32.totalorder %s16_s10, %s161_s18  ;;  %p167_p5 = scmp.lt.s32.totalorder %s161_s18, %s161_s18 }
   0xc   :  { %p168_p6 = por %p167_p5, %p166_p4 }
   0xe   :  { %p169_p7 = pnand %p168_p6, %p162_p3 }
  0x10   :  { %172 = shalt.err (!%p169_p7)
}
  0x11   :  { %s224_s19 = smov 128   ;;  %s225_s20 = smov 8  }
  0x12   :  { %21 = dma.hbm_to_vmem [thread:$0]  %s289_s0, 256, %s16_s10, [#allocation3], %s224_s19, %s224_s19, %s225_s20  }
  0x13   :  { %s226_s23 = smov [#allocation5]   ;;  %s173_s27 = scalar_lea.hbm %s290_s1, 256 }
  0x14   :  { %s27_s24 = sshll.u32 %s226_s23, 4  ;;  %p174_p8 = scmp.ne.s32.totalorder %s290_s1, %s173_s27  ;;  %s28_s24 = int_to_ptr.vmem [resolvable:$true] %s27_s24 }
  0x15   :  { %p177_p9 = scmp.lt.u32.totalorder %s173_s27, %s290_s1 }
  0x17   :  { %p179_p10 = pnand %p177_p9, %p174_p8 }
  0x19   :  { %182 = shalt.err (!%p179_p10)
}
  0x1a   :  { %s183_s4 = scalar_lea.vmem %s28_s24, 256  ;;  %p188_p12 = scmp.lt.s32.totalorder %s28_s24, %s28_s24 }
  0x1b   :  { %p184_p11 = scmp.ne.s32.totalorder %s28_s24, %s183_s4  ;;  %p189_p13 = scmp.lt.s32.totalorder %s183_s4, %s183_s4 }
  0x1d   :  { %p190_p0 = por %p189_p13, %p188_p12 }
  0x1f   :  { %p191_p1 = pnand %p190_p0, %p184_p11 }
  0x21   :  { %194 = shalt.err (!%p191_p1)
}
  0x22   :  { %s227_s0 = smov 64   ;;  %s228_s5 = smov 4  }
  0x23   :  { %33 = dma.hbm_to_vmem [thread:$0]  %s290_s1, 256, %s28_s24, [#allocation6], %s227_s0, %s227_s0, %s228_s5  }
  0x24   :  { %217 = dma.done.wait [#allocation3], 256  }
  0x25   :  { %218 = vsyncadd [#allocation3], 4294967040 }
  0x26   :  { %219 = dma.done.wait [#allocation6], 256  }
  0x27   :  { %220 = vsyncadd [#allocation6], 4294967040  ;;  %v229_v0 = vmov 0.0   ;;  %vm230_vm0 = vmmov 0   ;;  %v149_v1 = vld [vmem:[#allocation5] sm:$0xff]   ;;  %v150_v2 = vld [vmem:[#allocation5 + $0x8] sm:$0xff]  }
  0x28   :  { %132 = vmatprep.subr.bf16.mxu0 %v229_v0  ;;  %136 = vmatprep.mubr.msk.bf16.mxu0 %vm230_vm0, %v229_v0  ;;  %v41_v3 = vld [vmem:[#allocation2] sm:$0xff]  ;;  %v42_v4 = vld [vmem:[#allocation2 + $0x8] sm:$0xff]  ;;  %vm60_vm1 = vcmask 261120   ;;  %vm105_vm2 = vcmask 523264   ;;  %s231_s1 = smov [#allocation7]  }
  0x29   :  { %133 = vmatpush3.bf16.msra.mxu0 %v149_v1  ;;  %v43_v5 = vpack.c.bf16 %v42_v4, %v41_v3  ;;  %s113_s8 = sshll.u32 %s231_s1, 4  ;;  %s114_s8 = int_to_ptr.vmem [resolvable:$true] %s113_s8 }
  0x2a   :  { %134 = vmatprep.subr.bf16.mxu0 %v229_v0  ;;  %s195_s9 = scalar_lea.vmem %s114_s8, 256  ;;  %p200_p3 = scmp.lt.s32.totalorder %s114_s8, %s114_s8 }
  0x2b   :  { %p196_p2 = scmp.ne.s32.totalorder %s114_s8, %s195_s9  ;;  %p201_p4 = scmp.lt.s32.totalorder %s195_s9, %s195_s9 }
  0x2d   :  { %135 = vmatpush3.bf16.msra.mxu0 %v150_v2  ;;  %p202_p5 = por %p201_p4, %p200_p3 }
  0x2f   :  { %p203_p6 = pnand %p202_p5, %p196_p2 }
  0x30   :  { %137 = vmatmul.mubr.msk.bf16.vlgmr.msra.gmra.mrb[0].mxu0 %vm60_vm1, %v43_v5 }
 0x103   :  { %v98_v6 = vpop.f32.mrb[0].mxu0 }
 0x104   :  { %106 = vst.msk [vmem:[#allocation7] sm:$0xff] %vm105_vm2, %v98_v6  ;;  %v138_v7 = vpop.f32.mrb[1].mxu0 }
 0x105   :  { %v101_v8 = vpop.f32.mrb[2].mxu0 }
 0x106   :  { %107 = vst.msk [vmem:[#allocation7 + $0x8] sm:$0xff] %vm105_vm2, %v101_v8  ;;  %v139_v9 = vpop.f32.mrb[3].mxu0 }
 0x107   :  { %206 = shalt.err (!%p203_p6)
}
 0x108   :  { %s207_s12 = scalar_lea.hbm %s291_s2, 256 }
 0x109   :  { %p208_p7 = scmp.ne.s32.totalorder %s291_s2, %s207_s12  ;;  %p211_p8 = scmp.lt.u32.totalorder %s207_s12, %s291_s2 }
 0x10b   :  { %p213_p9 = pnand %p211_p8, %p208_p7 }
 0x10d   :  { %216 = shalt.err (!%p213_p9)
}
 0x10e   :  { %119 = dma.vmem_to_hbm [thread:$0]  %s114_s8, 256, %s291_s2, [#allocation4], %s224_s19, %s224_s19, %s225_s20  }
 0x10f   :  { %221 = dma.done.wait [#allocation4], 256  }
 0x110   :  { %222 = vsyncadd [#allocation4], 4294967040 }
 0x111   :  { %123 = vsyncpa [#allocation3], 1 }
 0x112   :  { %124 = vsyncpa [#allocation6], 1 }
 0x113   :  { %125 = vsyncpa [#allocation4], 1 }

</bundles_post_ra>
